<compile_context>
chip_gen: v5e
topology: v5e:2x2
jax: 0.10.0
libtpu: 0.0.40
codegen_flags: <defaults>
</compile_context>

<pallas_src>
import numpy as np
import jax
import jax.numpy as jnp
from jax import lax
from jax.experimental import pallas as pl
from jax.experimental.pallas import tpu as pltpu


# ---------------------------------------------------------------------------
# Filter / matrix construction (static numpy, float64 then cast to f32)
# ---------------------------------------------------------------------------

def _binomial_filter(filt_size):
    table = {
        1: [1.0],
        2: [1.0, 1.0],
        3: [1.0, 2.0, 1.0],
        4: [1.0, 3.0, 3.0, 1.0],
        5: [1.0, 4.0, 6.0, 4.0, 1.0],
        6: [1.0, 5.0, 10.0, 10.0, 5.0, 1.0],
        7: [1.0, 6.0, 15.0, 20.0, 15.0, 6.0, 1.0],
    }
    return np.asarray(table[filt_size], dtype=np.float64)


def _np_pad_mode(pad_type):
    if pad_type in ("refl", "reflect"):
        return "reflect"
    if pad_type in ("repl", "replicate"):
        return "edge"
    if pad_type == "zero":
        return "constant"
    raise ValueError(f"Pad type [{pad_type}] not recognized")


def _downsample_matrix(a_norm, in_size, out_size, stride):
    # M[i, stride*i + p] = a_norm[p]   (conv + stride along one padded axis)
    k = a_norm.shape[0]
    m = np.zeros((out_size, in_size), dtype=np.float64)
    for i in range(out_size):
        for p in range(k):
            m[i, stride * i + p] += a_norm[p]
    return m


def _pad_matrix(size, pad_l, pad_r, mode):
    # P (padded_size, size) such that P @ x == np.pad(x, (pad_l, pad_r), mode) along axis 0.
    eye = np.eye(size, dtype=np.float64)
    return np.pad(eye, ((pad_l, pad_r), (0, 0)), mode=mode)


# ---------------------------------------------------------------------------
# Pallas kernel
# ---------------------------------------------------------------------------

def _downsample_kernel(x_ref, av_ref, aht_ref, o_ref):
    TN, H, W = x_ref.shape
    _, Ho, Wo = o_ref.shape

    x = x_ref[...].astype(jnp.float32)                         # (TN, H, W)

    # Horizontal (W) pass: one large MXU matmul over every row of every image
    # in the block -> fills the systolic array's M dimension.
    y = jnp.dot(x.reshape(TN * H, W), aht_ref[...],
                preferred_element_type=jnp.float32)            # (TN*H, Wo)
    y = y.reshape(TN, H, Wo)

    # Vertical (H) pass: batched matmul, batch = image index.  Avoids any
    # in-kernel transpose; output comes out directly as (TN, Ho, Wo).
    av_b = jnp.broadcast_to(av_ref[...], (TN, Ho, H))
    out = lax.dot_general(
        av_b, y,
        dimension_numbers=(((2,), (1,)), ((0,), (0,))),
        preferred_element_type=jnp.float32)                    # (TN, Ho, Wo)

    o_ref[...] = out.astype(o_ref.dtype)


# ---------------------------------------------------------------------------
# Wrapper
# ---------------------------------------------------------------------------

def downsample(x, pad_type="reflect", filt_size=3, stride=2, pad_off=0):
    """x: (B, C, H, W), NCHW — same semantics as the PyTorch Downsample module."""
    B, C, H, W = x.shape

    pad_l = (filt_size - 1) // 2 + pad_off
    pad_r = int(np.ceil((filt_size - 1) / 2.0)) + pad_off
    Hp, Wp = H + pad_l + pad_r, W + pad_l + pad_r
    Ho = (Hp - filt_size) // stride + 1
    Wo = (Wp - filt_size) // stride + 1

    mode = _np_pad_mode(pad_type)
    a = _binomial_filter(filt_size)
    a_norm = a / a.sum()

    # Padding folded into the downsample matrices (padding is a linear map).
    av = _downsample_matrix(a_norm, Hp, Ho, stride)            # (Ho, Hp)
    ah = _downsample_matrix(a_norm, Wp, Wo, stride)            # (Wo, Wp)
    ph = _pad_matrix(H, pad_l, pad_r, mode)                    # (Hp, H)
    pw = _pad_matrix(W, pad_l, pad_r, mode)                    # (Wp, W)
    av_eff = jnp.asarray((av @ ph).astype(np.float32))         # (Ho, H)
    aht_eff = jnp.asarray((ah @ pw).T.astype(np.float32))      # (W, Wo)

    N = B * C
    x_flat = x.reshape(N, H, W)                                # metadata-only reshape

    # Per-step batch TN sized from a VMEM budget (input + output double-buffered,
    # plus in-kernel intermediates).  ~20 MiB keeps the pipeline comfortably inside
    # v7x's 64 MiB physical VMEM; v5e/v6e have more headroom.
    bytes_per_image = 4 * (2 * H * W + 2 * Ho * Wo + H * Wo + Ho * H)
    vmem_budget = 20 * 1024 * 1024
    TN = int(max(1, min(N, vmem_budget // max(bytes_per_image, 1))))
    grid_n = pl.cdiv(N, TN)

    needed = TN * bytes_per_image + 4 * (Ho * H + W * Wo)
    vmem_limit = int(min(48 * 1024 * 1024, max(32 * 1024 * 1024, 2 * needed)))

    flops = 2 * N * H * W * Wo + 2 * N * Ho * H * Wo
    bytes_accessed = 4 * (N * H * W + N * Ho * Wo + Ho * H + W * Wo)

    out = pl.pallas_call(
        _downsample_kernel,
        out_shape=jax.ShapeDtypeStruct((N, Ho, Wo), x.dtype),
        grid_spec=pltpu.PrefetchScalarGridSpec(
            num_scalar_prefetch=0,
            grid=(grid_n,),
            in_specs=[
                pl.BlockSpec((TN, H, W), lambda n: (n, 0, 0)),
                pl.BlockSpec((Ho, H), lambda n: (0, 0)),
                pl.BlockSpec((W, Wo), lambda n: (0, 0)),
            ],
            out_specs=pl.BlockSpec((TN, Ho, Wo), lambda n: (n, 0, 0)),
        ),
        compiler_params=pltpu.CompilerParams(
            dimension_semantics=("parallel",),
            vmem_limit_bytes=vmem_limit,
        ),
        cost_estimate=pl.CostEstimate(
            flops=flops, transcendentals=0, bytes_accessed=bytes_accessed),
    )(x_flat, av_eff, aht_eff)

    return out.reshape(B, C, Ho, Wo)


# ---------------------------------------------------------------------------
# Pure-JAX reference (mirrors F.conv2d(pad(x), filt, stride, groups=C))
# ---------------------------------------------------------------------------

def _reference(x, pad_type="reflect", filt_size=3, stride=2, pad_off=0):
    B, C, H, W = x.shape
    pad_l = (filt_size - 1) // 2 + pad_off
    pad_r = int(np.ceil((filt_size - 1) / 2.0)) + pad_off
    xp = jnp.pad(x, ((0, 0), (0, 0), (pad_l, pad_r), (pad_l, pad_r)),
                 mode=_np_pad_mode(pad_type))
    a = _binomial_filter(filt_size)
    filt2d = np.outer(a, a)
    filt2d = (filt2d / filt2d.sum()).astype(np.float32)
    filt = jnp.asarray(np.tile(filt2d[None, None], (C, 1, 1, 1)))    # (C,1,f,f)
    return lax.conv_general_dilated(
        xp, filt, window_strides=(stride, stride), padding="VALID",
        feature_group_count=C,
        dimension_numbers=("NCHW", "OIHW", "NCHW"),
    )


if __name__ == "__main__":
    key = jax.random.PRNGKey(0)
    x = jax.random.normal(key, (2, 4, 16, 16), dtype=jnp.float32)

    out = downsample(x, pad_type="reflect", filt_size=3, stride=2, pad_off=0)
    out = jax.block_until_ready(out)

    ref = _reference(x, pad_type="reflect", filt_size=3, stride=2, pad_off=0)
    assert out.shape == (2, 4, 8, 8), out.shape
    np.testing.assert_allclose(np.asarray(out), np.asarray(ref), rtol=1e-5, atol=1e-5)

    print("KERNEL_OK")
</pallas_src>

<mosaic_0001>
module attributes {stable_mosaic.version = 11 : i64} {
  func.func @_downsample_kernel(%arg0: i32, %arg1: memref<8x16x16xf32, #tpu.memory_space<vmem>>, %arg2: memref<8x16xf32, #tpu.memory_space<vmem>>, %arg3: memref<16x8xf32, #tpu.memory_space<vmem>>, %arg4: memref<8x8x8xf32, #tpu.memory_space<vmem>>) attributes {dimension_semantics = [#tpu.dimension_semantics<parallel>], iteration_bounds = array<i64: 1>, scalar_prefetch = 0 : i64, scratch_operands = 0 : i64, tpu.core_type = #tpu.core_type<tc>, window_params = [{transform_indices = @transform_0, window_bounds = array<i64: 8, 16, 16>}, {pipeline_mode = #tpu.pipeline_mode<synchronous>, transform_indices = @transform_1, window_bounds = array<i64: 8, 16>}, {pipeline_mode = #tpu.pipeline_mode<synchronous>, transform_indices = @transform_2, window_bounds = array<i64: 16, 8>}, {transform_indices = @transform_3, window_bounds = array<i64: 8, 8, 8>}]} {
    %c0 = arith.constant 0 : index
    %c0_0 = arith.constant 0 : index
    %c0_1 = arith.constant 0 : index
    %0 = vector.load %arg1[%c0, %c0_0, %c0_1] : memref<8x16x16xf32, #tpu.memory_space<vmem>>, vector<8x16x16xf32>
    %1 = vector.shape_cast %0 : vector<8x16x16xf32> to vector<128x16xf32>
    %c0_2 = arith.constant 0 : index
    %c0_3 = arith.constant 0 : index
    %2 = vector.load %arg3[%c0_2, %c0_3] : memref<16x8xf32, #tpu.memory_space<vmem>>, vector<16x8xf32>
    %cst = arith.constant dense<0.000000e+00> : vector<128x8xf32>
    %3 = tpu.matmul %1, %2, %cst {dimension_numbers = #tpu.dot_dimension_numbers<[1], [0], [0], [1], [0, 0, 1, 1], [], []>} : vector<128x16xf32>, vector<16x8xf32>, vector<128x8xf32> -> vector<128x8xf32>
    %4 = vector.shape_cast %3 : vector<128x8xf32> to vector<8x16x8xf32>
    %c0_4 = arith.constant 0 : index
    %c0_5 = arith.constant 0 : index
    %5 = vector.load %arg2[%c0_4, %c0_5] : memref<8x16xf32, #tpu.memory_space<vmem>>, vector<8x16xf32>
    %6 = vector.shape_cast %5 : vector<8x16xf32> to vector<1x8x16xf32>
    %7 = vector.broadcast %6 : vector<1x8x16xf32> to vector<8x8x16xf32>
    %cst_6 = arith.constant dense<0.000000e+00> : vector<8x8x8xf32>
    %8 = tpu.matmul %7, %4, %cst_6 {dimension_numbers = #tpu.dot_dimension_numbers<[2], [1], [1], [2], [0, 0, 0, 1, 1, 2], [0], [0]>} : vector<8x8x16xf32>, vector<8x16x8xf32>, vector<8x8x8xf32> -> vector<8x8x8xf32>
    %c0_7 = arith.constant 0 : index
    %c0_8 = arith.constant 0 : index
    %c0_9 = arith.constant 0 : index
    %9 = vector.load %arg4[%c0_7, %c0_8, %c0_9] : memref<8x8x8xf32, #tpu.memory_space<vmem>>, vector<8x8x8xf32>
    tpu.vector_store %arg4[%c0_7, %c0_8, %c0_9], %8 {strides = array<i32>} : memref<8x8x8xf32, #tpu.memory_space<vmem>>, vector<8x8x8xf32>,
    return
  }
  func.func @transform_0(%arg0: i32) -> (i32, i32, i32) {
    %c0_i32 = arith.constant 0 : i32
    %c0_i32_0 = arith.constant 0 : i32
    %c0_i32_1 = arith.constant 0 : i32
    return %arg0, %c0_i32, %c0_i32_0 : i32, i32, i32
  }
  func.func @transform_1(%arg0: i32) -> (i32, i32) {
    %c0_i32 = arith.constant 0 : i32
    %c0_i32_0 = arith.constant 0 : i32
    %c0_i32_1 = arith.constant 0 : i32
    return %c0_i32, %c0_i32_0 : i32, i32
  }
  func.func @transform_2(%arg0: i32) -> (i32, i32) {
    %c0_i32 = arith.constant 0 : i32
    %c0_i32_0 = arith.constant 0 : i32
    %c0_i32_1 = arith.constant 0 : i32
    return %c0_i32, %c0_i32_0 : i32, i32
  }
  func.func @transform_3(%arg0: i32) -> (i32, i32, i32) {
    %c0_i32 = arith.constant 0 : i32
    %c0_i32_0 = arith.constant 0 : i32
    %c0_i32_1 = arith.constant 0 : i32
    return %arg0, %c0_i32, %c0_i32_0 : i32, i32, i32
  }
}

</mosaic_0001>

<bundles_post_ra>
// kernel: tpu_custom_call.1
= control target key start
LH: loop header
LB: loop body
LE: loop exit
PB: predicated region body
PF: predicated region fallthrough
CT: control target
= control target key end

     0   :  { %8 = vsyncpa [#allocation3], 0  ;;  %s518_s0 = inlined_call_operand.hbm [shape: f32[8,16,16], index: 0, kind: input, shape index: {}]   ;;  %s519_s1 = inlined_call_operand.vmem [shape: f32[8,16], index: 1, kind: input, shape index: {}]   ;;  %s520_s2 = inlined_call_operand.vmem [shape: f32[16,8], index: 2, kind: input, shape index: {}]   ;;  %s521_s3 = inlined_call_operand.hbm [shape: f32[8,8,8], index: 3, kind: output, shape index: {}]  }
   0x1   :  { %9 = vsyncpa [#allocation4], 0  ;;  %s14_s14 = sshll.u32 %s518_s0, 4  ;;  %s441_s15 = smov [#allocation2]   ;;  %s15_s14 = int_to_ptr.hbm [resolvable:$true] %s14_s14 }
   0x2   :  { %s16_s16 = sshll.u32 %s441_s15, 4  ;;  %s442_s17 = smov 128   ;;  %s17_s16 = int_to_ptr.vmem [resolvable:$true] %s16_s16 }
   0x3   :  { %s443_s18 = smov 8  }
   0x4   :  { %22 = dma.hbm_to_vmem [thread:$0]  %s15_s14, 2048, %s17_s16, [#allocation3], %s442_s17, %s442_s17, %s443_s18  }
   0x5   :  { %437 = dma.done.wait [#allocation3], 2048  }
   0x6   :  { %438 = vsyncadd [#allocation3], 4294965248  ;;  %v48_v0 = vld [vmem:[%s520_s2 + $0x8] sm:$0xff]  ;;  %v47_v1 = vld [vmem:[%s520_s2] sm:$0xff]  ;;  %vm49_vm0 = vcmask 130048   ;;  %vm327_vm1 = vcmask 64512  }
   0x7   :  { %112 = vmatpush.msra.mxu0 %v48_v0  ;;  %v31_v2 = vld [vmem:[#allocation2] sm:$0xff]  ;;  %381 = vmatpush.msra.mxu3 %v48_v0  ;;  %v37_v4 = vld [vmem:[#allocation2 + $0x30] sm:$0xff]  ;;  %v40_v5 = vld [vmem:[#allocation2 + $0x48] sm:$0xff]  ;;  %s342_s26 = sshll.u32 %s521_s3, 4  ;;  %s343_s26 = int_to_ptr.hbm [resolvable:$true] %s342_s26 }
   0x8   :  { %379 = vmatpush.msra.mxu1 %v48_v0  ;;  %v43_v3 = vld [vmem:[#allocation2 + $0x60] sm:$0xff]  ;;  %380 = vmatpush.msra.mxu2 %v48_v0  ;;  %v32_v6 = vld [vmem:[#allocation2 + $0x8] sm:$0xff]  ;;  %v38_v8 = vld [vmem:[#allocation2 + $0x38] sm:$0xff] }
   0x9   :  { %113 = vmatpush.msra.mxu0 %v47_v1  ;;  %384 = vmatpush.msra.mxu3 %v47_v1  ;;  %v44_v7 = vld [vmem:[#allocation2 + $0x68] sm:$0xff]  ;;  %v41_v9 = vld [vmem:[#allocation2 + $0x50] sm:$0xff]  ;;  %v42_v12 = vld [vmem:[#allocation2 + $0x58] sm:$0xff] }
   0xa   :  { %355 = vmatmul.msk.f32.vlgmr.msra.gmra.mxu0 %vm49_vm0, %v31_v2  ;;  %367 = vmatmul.msk.f32.vlgmr.msra.gmra.mxu3 %vm49_vm0, %v43_v3  ;;  %v33_v10 = vld [vmem:[#allocation2 + $0x10] sm:$0xff]  ;;  %v39_v13 = vld [vmem:[#allocation2 + $0x40] sm:$0xff]  ;;  %v34_v14 = vld [vmem:[#allocation2 + $0x18] sm:$0xff] }
   0xb   :  { %382 = vmatpush.msra.mxu1 %v47_v1  ;;  %383 = vmatpush.msra.mxu2 %v47_v1  ;;  %v45_v11 = vld [vmem:[#allocation2 + $0x70] sm:$0xff]  ;;  %v46_v15 = vld [vmem:[#allocation2 + $0x78] sm:$0xff]  ;;  %v35_v16 = vld [vmem:[#allocation2 + $0x20] sm:$0xff] }
   0xc   :  { %361 = vmatmul.msk.f32.vlgmr.msra.gmra.mxu1 %vm49_vm0, %v37_v4  ;;  %364 = vmatmul.msk.f32.vlgmr.msra.gmra.mxu2 %vm49_vm0, %v40_v5  ;;  %v36_v17 = vld [vmem:[#allocation2 + $0x28] sm:$0xff]  ;;  %v163_v23 = vld [vmem:[%s519_s1] sm:$0xff]  ;;  %s444_s1 = smov [#allocation5]  }
   0xd   :  { %s340_s23 = sshll.u32 %s444_s1, 4  ;;  %s341_s23 = int_to_ptr.vmem [resolvable:$true] %s340_s23 }
  0x12   :  { %356 = vmatmul.msk.f32.gmra.mxu0 %vm49_vm0, %v32_v6  ;;  %368 = vmatmul.msk.f32.gmra.mxu3 %vm49_vm0, %v44_v7 }
  0x14   :  { %362 = vmatmul.msk.f32.gmra.mxu1 %vm49_vm0, %v38_v8  ;;  %365 = vmatmul.msk.f32.gmra.mxu2 %vm49_vm0, %v41_v9 }
  0x1a   :  { %357 = vmatmul.msk.f32.gmra.mxu0 %vm49_vm0, %v33_v10  ;;  %369 = vmatmul.msk.f32.gmra.mxu3 %vm49_vm0, %v45_v11 }
  0x1c   :  { %366 = vmatmul.msk.f32.gmra.mxu2 %vm49_vm0, %v42_v12  ;;  %363 = vmatmul.msk.f32.gmra.mxu1 %vm49_vm0, %v39_v13 }
  0x22   :  { %358 = vmatmul.msk.f32.gmra.mxu0 %vm49_vm0, %v34_v14  ;;  %370 = vmatmul.msk.f32.gmra.mxu3 %vm49_vm0, %v46_v15 }
  0x2a   :  { %359 = vmatmul.msk.f32.gmra.mxu0 %vm49_vm0, %v35_v16 }
  0x32   :  { %360 = vmatmul.msk.f32.gmra.mxu0 %vm49_vm0, %v36_v17 }
  0x87   :  { %v115_v18 = vpop.f32.mrf.mxu0 }
  0x89   :  { %v133_v19 = vpop.f32.mrf.mxu1 }
  0x8d   :  { %v151_v20 = vpop.f32.mrf.mxu3 }
  0x8f   :  { %v118_v21 = vpop.f32.mrf.mxu0  ;;  %v142_v26 = vpop.f32.mrf.mxu2 }
  0x90   :  { %181 = vmatpush.msrb.mxu1 %v118_v21 }
  0x91   :  { %v136_v22 = vpop.f32.mrf.mxu1 }
  0x92   :  { %182 = vmatpush.msrb.mxu1 %v115_v18 }
  0x93   :  { %371 = vmatmul.msk.f32.vlgmr.msrb.gmra.mxu1 %vm49_vm0, %v163_v23 }
  0x94   :  { %241 = vmatpush.msra.mxu1 %v136_v22 }
  0x95   :  { %v154_v24 = vpop.f32.mrf.mxu3 }
  0x96   :  { %242 = vmatpush.msra.mxu1 %v133_v19 }
  0x97   :  { %v121_v25 = vpop.f32.mrf.mxu0  ;;  %v145_v31 = vpop.f32.mrf.mxu2 }
  0x98   :  { %301 = vmatpush.msrb.mxu1 %v154_v24 }
  0x99   :  { %v139_v29 = vpop.f32.mrf.mxu1 }
  0x9a   :  { %302 = vmatpush.msrb.mxu1 %v151_v20 }
  0x9b   :  { %374 = vmatmul.msk.f32.vlgmr.msra.gmra.mxu1 %vm49_vm0, %v163_v23 }
  0x9d   :  { %v157_v27 = vpop.f32.mrf.mxu3 }
  0x9f   :  { %v124_v28 = vpop.f32.mrf.mxu0  ;;  %v148_v34 = vpop.f32.mrf.mxu2 }
  0xa0   :  { %201 = vmatpush.msrb.mxu2 %v124_v28 }
  0xa2   :  { %202 = vmatpush.msrb.mxu2 %v121_v25 }
  0xa3   :  { %372 = vmatmul.msk.f32.vlgmr.msrb.gmra.mxu2 %vm49_vm0, %v163_v23  ;;  %377 = vmatmul.msk.f32.vlgmr.msrb.gmra.mxu1 %vm49_vm0, %v163_v23 }
  0xa4   :  { %261 = vmatpush.msra.mxu2 %v142_v26 }
  0xa5   :  { %v160_v30 = vpop.f32.mrf.mxu3 }
  0xa6   :  { %262 = vmatpush.msra.mxu2 %v139_v29 }
  0xa7   :  { %v127_v32 = vpop.f32.mrf.mxu0 }
  0xa8   :  { %321 = vmatpush.msrb.mxu2 %v160_v30 }
  0xaa   :  { %322 = vmatpush.msrb.mxu2 %v157_v27 }
  0xab   :  { %375 = vmatmul.msk.f32.vlgmr.msra.gmra.mxu2 %vm49_vm0, %v163_v23 }
  0xaf   :  { %v130_v33 = vpop.f32.mrf.mxu0 }
  0xb0   :  { %221 = vmatpush.msrb.mxu3 %v130_v33 }
  0xb2   :  { %222 = vmatpush.msrb.mxu3 %v127_v32 }
  0xb3   :  { %373 = vmatmul.msk.f32.vlgmr.msrb.gmra.mxu3 %vm49_vm0, %v163_v23  ;;  %378 = vmatmul.msk.f32.vlgmr.msrb.gmra.mxu2 %vm49_vm0, %v163_v23 }
  0xb4   :  { %281 = vmatpush.msra.mxu3 %v148_v34 }
  0xb6   :  { %282 = vmatpush.msra.mxu3 %v145_v31 }
  0xbb   :  { %376 = vmatmul.msk.f32.vlgmr.msra.gmra.mxu3 %vm49_vm0, %v163_v23 }
 0x110   :  { %v184_v35 = vpop.f32.mrf.mxu1 }
 0x111   :  { %328 = vst.msk [vmem:[#allocation5] sm:$0xff] %vm327_vm1, %v184_v35 }
 0x118   :  { %v244_v36 = vpop.f32.mrf.mxu1 }
 0x119   :  { %331 = vst.msk [vmem:[#allocation5 + $0x18] sm:$0xff] %vm327_vm1, %v244_v36 }
 0x120   :  { %v304_v37 = vpop.f32.mrf.mxu1 }
 0x121   :  { %334 = vst.msk [vmem:[#allocation5 + $0x30] sm:$0xff] %vm327_vm1, %v304_v37 }
 0x126   :  { %v204_v38 = vpop.f32.mrf.mxu2 }
 0x127   :  { %329 = vst.msk [vmem:[#allocation5 + $0x8] sm:$0xff] %vm327_vm1, %v204_v38 }
 0x12e   :  { %v264_v39 = vpop.f32.mrf.mxu2 }
 0x12f   :  { %332 = vst.msk [vmem:[#allocation5 + $0x20] sm:$0xff] %vm327_vm1, %v264_v39 }
 0x136   :  { %v224_v40 = vpop.f32.mrf.mxu3  ;;  %v324_v41 = vpop.f32.mrf.mxu2 }
 0x137   :  { %330 = vst.msk [vmem:[#allocation5 + $0x10] sm:$0xff] %vm327_vm1, %v224_v40 }
 0x138   :  { %335 = vst.msk [vmem:[#allocation5 + $0x38] sm:$0xff] %vm327_vm1, %v324_v41 }
 0x13e   :  { %v284_v42 = vpop.f32.mrf.mxu3 }
 0x13f   :  { %333 = vst.msk [vmem:[#allocation5 + $0x28] sm:$0xff] %vm327_vm1, %v284_v42 }
 0x140   :  { %348 = dma.vmem_to_hbm [thread:$0]  %s341_s23, 1024, %s343_s26, [#allocation4], %s442_s17, %s442_s17, %s443_s18  }
 0x141   :  { %439 = dma.done.wait [#allocation4], 1024  }
 0x142   :  { %440 = vsyncadd [#allocation4], 4294966272 }
 0x143   :  { %353 = vsyncpa [#allocation3], 1 }
 0x144   :  { %354 = vsyncpa [#allocation4], 1 }

</bundles_post_ra>
